<compile_context>
chip_gen: v5e
topology: v5e:2x2
jax: 0.10.0
libtpu: 0.0.40
codegen_flags: <defaults>
</compile_context>

<pallas_src>
import jax
import jax.numpy as jnp
from jax.experimental import pallas as pl
from jax.experimental.pallas import tpu as pltpu


def add_value_kernel(v_ref, s_ref, b1_ref, wr_ref, out_ref, mout_ref):
    # v_ref   : (TILE_R, P*F)      packed input tile (lane-dense)
    # s_ref   : (P*F, P*num_g)     kron(I_P, blockdiag(w1))   -- grid invariant, VMEM resident
    # b1_ref  : (1, P*num_g)       tiled per-group bias        -- grid invariant
    # wr_ref  : (P*num_g, P)       kron(I_P, wout)             -- grid invariant
    # out_ref : (TILE_R, P)
    # mout_ref: (TILE_R, P*num_g)
    m = jnp.dot(v_ref[...], s_ref[...], preferred_element_type=jnp.float32) + b1_ref[...]
    mout_ref[...] = m.astype(mout_ref.dtype)
    out = jnp.dot(m, wr_ref[...], preferred_element_type=jnp.float32)
    out_ref[...] = out.astype(out_ref.dtype)


def add_value_forward(x, w1, b1, wout, num_g, gama, *, batch_tile=16384, pack=None):
    """Forward pass of Add_value.

    x    : any shape whose flattened form is (B, num_g * gama)
    w1   : (num_g, gama)   stacked Linear(gama, 1) weights
    b1   : (num_g,)        stacked Linear(gama, 1) biases
    wout : (num_g, 1)      Linear(num_g, 1, bias=False) weight, transposed
    Returns (out: (B, 1), m_out: (B, num_g)) in x.dtype.
    """
    F = num_g * gama
    v = x.reshape(-1, F)
    B = v.shape[0]
    dt = v.dtype

    # ---- choose row packing P (P*num_g lanes for m_out per packed row) ---------
    if pack is None:
        P = 1 if num_g >= 64 else max(1, min(16, 64 // num_g))
    else:
        P = int(pack)

    Bpad = ((B + P - 1) // P) * P
    if Bpad != B:
        # pad only to the next multiple of P (< P extra rows), not to the tile size
        v = jnp.pad(v, ((0, Bpad - B), (0, 0)))
    R = Bpad // P
    vp = v.reshape(R, P * F)  # free metadata reshape

    # ---- batch tiling over packed rows ------------------------------------------
    rows_per_tile = max(1, batch_tile // P)
    if rows_per_tile >= R or R <= 8:
        tile_r = R
    else:
        tile_r = max(8, (min(rows_per_tile, R) // 8) * 8)
    # v7x has 2 TensorCores: keep >= 2 grid steps when there is enough work
    if R >= 16:
        half = ((-(-R // 2)) + 7) // 8 * 8
        tile_r = min(tile_r, half)
    nb = pl.cdiv(R, tile_r)

    # ---- fold per-group weights into block-diagonal matrices --------------------
    w1_flat = w1.reshape(F).astype(jnp.float32)
    gidx = jnp.repeat(jnp.arange(num_g), gama)
    s = jnp.where(gidx[:, None] == jnp.arange(num_g)[None, :],
                  w1_flat[:, None], 0.0)                               # (F, num_g)
    eye_p = jnp.eye(P, dtype=jnp.float32)
    s_big = jnp.kron(eye_p, s).astype(dt)                              # (P*F, P*num_g)
    b1_big = jnp.tile(b1.reshape(num_g).astype(jnp.float32), P).reshape(1, P * num_g)
    wr_big = jnp.kron(eye_p, wout.reshape(num_g, 1).astype(jnp.float32))  # (P*num_g, P)

    out_p, m_p = pl.pallas_call(
        add_value_kernel,
        out_shape=(
            jax.ShapeDtypeStruct((R, P), dt),
            jax.ShapeDtypeStruct((R, P * num_g), dt),
        ),
        grid=(nb,),
        in_specs=[
            pl.BlockSpec((tile_r, P * F), lambda i: (i, 0)),       # packed input, batch tiled
            pl.BlockSpec((P * F, P * num_g), lambda i: (0, 0)),    # weights: VMEM resident
            pl.BlockSpec((1, P * num_g), lambda i: (0, 0)),
            pl.BlockSpec((P * num_g, P), lambda i: (0, 0)),
        ],
        out_specs=(
            pl.BlockSpec((tile_r, P), lambda i: (i, 0)),
            pl.BlockSpec((tile_r, P * num_g), lambda i: (i, 0)),
        ),
        compiler_params=pltpu.CompilerParams(
            dimension_semantics=("parallel",),
        ),
    )(vp, s_big, b1_big, wr_big)

    out = out_p.reshape(Bpad, 1)
    m_out = m_p.reshape(Bpad, num_g)
    if Bpad != B:
        out = out[:B]
        m_out = m_out[:B]
    return out, m_out


def reference_forward(x, w1, b1, wout, num_g, gama):
    v = x.reshape(-1, num_g * gama)
    m = jnp.einsum("bgj,gj->bg", v.reshape(-1, num_g, gama), w1) + b1[None, :]
    out = m @ wout
    return out, m


if __name__ == "__main__":
    num_g, gama = 4, 8

    key = jax.random.PRNGKey(0)
    kx, kw1, kb1, kwo, kx2 = jax.random.split(key, 5)

    # Deterministic synthetic parameters (shapes follow the nn.Linear definitions).
    w1 = jax.random.normal(kw1, (num_g, gama), dtype=jnp.float32) * 0.1   # stacked Linear(gama,1) weights
    b1 = jax.random.normal(kb1, (num_g,), dtype=jnp.float32) * 0.1        # stacked Linear(gama,1) biases
    wout = jax.random.normal(kwo, (num_g, 1), dtype=jnp.float32) * 0.1    # Linear(num_g,1,bias=False) weight^T

    # Small shape matching the module's forward (batch=2).
    x = jax.random.normal(kx, (2, num_g, gama), dtype=jnp.float32)
    out, m_out = add_value_forward(x, w1, b1, wout, num_g, gama)
    out = jax.block_until_ready(out)
    m_out = jax.block_until_ready(m_out)
    ref_out, ref_m = reference_forward(x, w1, b1, wout, num_g, gama)
    assert out.shape == (2, 1) and m_out.shape == (2, num_g)
    assert jnp.allclose(out, ref_out, atol=1e-5, rtol=1e-5)
    assert jnp.allclose(m_out, ref_m, atol=1e-5, rtol=1e-5)

    # Second check exercising the padded + multi-tile (>= 2 grid step) path.
    x2 = jax.random.normal(kx2, (510, num_g, gama), dtype=jnp.float32)
    out2, m2 = add_value_forward(x2, w1, b1, wout, num_g, gama)
    out2 = jax.block_until_ready(out2)
    m2 = jax.block_until_ready(m2)
    ref_out2, ref_m2 = reference_forward(x2, w1, b1, wout, num_g, gama)
    assert out2.shape == (510, 1) and m2.shape == (510, num_g)
    assert jnp.allclose(out2, ref_out2, atol=1e-5, rtol=1e-5)
    assert jnp.allclose(m2, ref_m2, atol=1e-5, rtol=1e-5)

    print("KERNEL_OK")
</pallas_src>

<mosaic_0001>
module attributes {stable_mosaic.version = 11 : i64} {
  func.func @add_value_kernel(%arg0: i32, %arg1: memref<1x512xf32, #tpu.memory_space<vmem>>, %arg2: memref<512x64xf32, #tpu.memory_space<vmem>>, %arg3: memref<1x64xf32, #tpu.memory_space<vmem>>, %arg4: memref<64x16xf32, #tpu.memory_space<vmem>>, %arg5: memref<1x16xf32, #tpu.memory_space<vmem>>, %arg6: memref<1x64xf32, #tpu.memory_space<vmem>>) attributes {dimension_semantics = [#tpu.dimension_semantics<parallel>], iteration_bounds = array<i64: 1>, scalar_prefetch = 0 : i64, scratch_operands = 0 : i64, tpu.core_type = #tpu.core_type<tc>, window_params = [{transform_indices = @transform_0, window_bounds = array<i64: 1, 512>}, {pipeline_mode = #tpu.pipeline_mode<synchronous>, transform_indices = @transform_1, window_bounds = array<i64: 512, 64>}, {pipeline_mode = #tpu.pipeline_mode<synchronous>, transform_indices = @transform_2, window_bounds = array<i64: 1, 64>}, {pipeline_mode = #tpu.pipeline_mode<synchronous>, transform_indices = @transform_3, window_bounds = array<i64: 64, 16>}, {transform_indices = @transform_4, window_bounds = array<i64: 1, 16>}, {transform_indices = @transform_5, window_bounds = array<i64: 1, 64>}]} {
    %c0 = arith.constant 0 : index
    %c0_0 = arith.constant 0 : index
    %0 = vector.load %arg1[%c0, %c0_0] : memref<1x512xf32, #tpu.memory_space<vmem>>, vector<1x512xf32>
    %c0_1 = arith.constant 0 : index
    %c0_2 = arith.constant 0 : index
    %1 = vector.load %arg2[%c0_1, %c0_2] : memref<512x64xf32, #tpu.memory_space<vmem>>, vector<512x64xf32>
    %cst = arith.constant dense<0.000000e+00> : vector<1x64xf32>
    %2 = tpu.matmul %0, %1, %cst {dimension_numbers = #tpu.dot_dimension_numbers<[1], [0], [0], [1], [0, 0, 1, 1], [], []>} : vector<1x512xf32>, vector<512x64xf32>, vector<1x64xf32> -> vector<1x64xf32>
    %c0_3 = arith.constant 0 : index
    %c0_4 = arith.constant 0 : index
    %3 = vector.load %arg3[%c0_3, %c0_4] : memref<1x64xf32, #tpu.memory_space<vmem>>, vector<1x64xf32>
    %4 = arith.addf %2, %3 : vector<1x64xf32>
    %c0_5 = arith.constant 0 : index
    %c0_6 = arith.constant 0 : index
    %5 = vector.load %arg6[%c0_5, %c0_6] : memref<1x64xf32, #tpu.memory_space<vmem>>, vector<1x64xf32>
    tpu.vector_store %arg6[%c0_5, %c0_6], %4 {strides = array<i32>} : memref<1x64xf32, #tpu.memory_space<vmem>>, vector<1x64xf32>,
    %c0_7 = arith.constant 0 : index
    %c0_8 = arith.constant 0 : index
    %6 = vector.load %arg4[%c0_7, %c0_8] : memref<64x16xf32, #tpu.memory_space<vmem>>, vector<64x16xf32>
    %cst_9 = arith.constant dense<0.000000e+00> : vector<1x16xf32>
    %7 = tpu.matmul %4, %6, %cst_9 {dimension_numbers = #tpu.dot_dimension_numbers<[1], [0], [0], [1], [0, 0, 1, 1], [], []>} : vector<1x64xf32>, vector<64x16xf32>, vector<1x16xf32> -> vector<1x16xf32>
    %c0_10 = arith.constant 0 : index
    %c0_11 = arith.constant 0 : index
    %8 = vector.load %arg5[%c0_10, %c0_11] : memref<1x16xf32, #tpu.memory_space<vmem>>, vector<1x16xf32>
    tpu.vector_store %arg5[%c0_10, %c0_11], %7 {strides = array<i32>} : memref<1x16xf32, #tpu.memory_space<vmem>>, vector<1x16xf32>,
    return
  }
  func.func @transform_0(%arg0: i32) -> (i32, i32) {
    %c0_i32 = arith.constant 0 : i32
    %c0_i32_0 = arith.constant 0 : i32
    return %arg0, %c0_i32 : i32, i32
  }
  func.func @transform_1(%arg0: i32) -> (i32, i32) {
    %c0_i32 = arith.constant 0 : i32
    %c0_i32_0 = arith.constant 0 : i32
    %c0_i32_1 = arith.constant 0 : i32
    return %c0_i32, %c0_i32_0 : i32, i32
  }
  func.func @transform_2(%arg0: i32) -> (i32, i32) {
    %c0_i32 = arith.constant 0 : i32
    %c0_i32_0 = arith.constant 0 : i32
    %c0_i32_1 = arith.constant 0 : i32
    return %c0_i32, %c0_i32_0 : i32, i32
  }
  func.func @transform_3(%arg0: i32) -> (i32, i32) {
    %c0_i32 = arith.constant 0 : i32
    %c0_i32_0 = arith.constant 0 : i32
    %c0_i32_1 = arith.constant 0 : i32
    return %c0_i32, %c0_i32_0 : i32, i32
  }
  func.func @transform_4(%arg0: i32) -> (i32, i32) {
    %c0_i32 = arith.constant 0 : i32
    %c0_i32_0 = arith.constant 0 : i32
    return %arg0, %c0_i32 : i32, i32
  }
  func.func @transform_5(%arg0: i32) -> (i32, i32) {
    %c0_i32 = arith.constant 0 : i32
    %c0_i32_0 = arith.constant 0 : i32
    return %arg0, %c0_i32 : i32, i32
  }
}

</mosaic_0001>

<bundles_post_ra>
// kernel: tpu_custom_call.1
= control target key start
LH: loop header
LB: loop body
LE: loop exit
PB: predicated region body
PF: predicated region fallthrough
CT: control target
= control target key end

     0   :  { %11 = vsyncpa [#allocation3], 0  ;;  %s559_s0 = inlined_call_operand.vmem [shape: f32[1,512], index: 0, kind: input, shape index: {}]   ;;  %s560_s1 = inlined_call_operand.vmem [shape: f32[512,64], index: 1, kind: input, shape index: {}]   ;;  %s561_s2 = inlined_call_operand.vmem [shape: f32[1,64], index: 2, kind: input, shape index: {}]   ;;  %s562_s3 = inlined_call_operand.vmem [shape: f32[64,16], index: 3, kind: input, shape index: {}]   ;;  %s563_s4 = inlined_call_operand.hbm [shape: f32[1,16], index: 4, kind: output, shape index: {0}]   ;;  %s564_s5 = inlined_call_operand.hbm [shape: f32[1,64], index: 5, kind: output, shape index: {1}]  }
   0x1   :  { %v69_v0 = vld [vmem:[%s560_s1 + $0x178] sm:$0xff]  ;;  %v68_v2 = vld [vmem:[%s560_s1 + $0x170] sm:$0xff]  ;;  %v67_v6 = vld [vmem:[%s560_s1 + $0x168] sm:$0xff] }
   0x2   :  { %v37_v1 = vld [vmem:[%s560_s1 + $0x78] sm:$0xff]  ;;  %136 = vmatpush.msra.mxu2 %v69_v0  ;;  %v36_v4 = vld [vmem:[%s560_s1 + $0x70] sm:$0xff]  ;;  %v35_v8 = vld [vmem:[%s560_s1 + $0x68] sm:$0xff] }
   0x3   :  { %96 = vmatpush.msra.mxu0 %v37_v1  ;;  %v85_v3 = vld [vmem:[%s560_s1 + $0x1f8] sm:$0xff]  ;;  %v84_v7 = vld [vmem:[%s560_s1 + $0x1f0] sm:$0xff]  ;;  %v83_v10 = vld [vmem:[%s560_s1 + $0x1e8] sm:$0xff] }
   0x4   :  { %v53_v5 = vld [vmem:[%s560_s1 + $0xf8] sm:$0xff]  ;;  %156 = vmatpush.msra.mxu3 %v85_v3  ;;  %137 = vmatpush.msra.mxu2 %v68_v2  ;;  %v52_v9 = vld [vmem:[%s560_s1 + $0xf0] sm:$0xff]  ;;  %v66_v11 = vld [vmem:[%s560_s1 + $0x160] sm:$0xff] }
   0x5   :  { %116 = vmatpush.msra.mxu1 %v53_v5  ;;  %97 = vmatpush.msra.mxu0 %v36_v4  ;;  %v34_v12 = vld [vmem:[%s560_s1 + $0x60] sm:$0xff]  ;;  %v51_v13 = vld [vmem:[%s560_s1 + $0xe8] sm:$0xff]  ;;  %v65_v16 = vld [vmem:[%s560_s1 + $0x158] sm:$0xff] }
   0x6   :  { %157 = vmatpush.msra.mxu3 %v84_v7  ;;  %138 = vmatpush.msra.mxu2 %v67_v6  ;;  %v82_v14 = vld [vmem:[%s560_s1 + $0x1e0] sm:$0xff]  ;;  %v33_v17 = vld [vmem:[%s560_s1 + $0x58] sm:$0xff]  ;;  %v64_v20 = vld [vmem:[%s560_s1 + $0x150] sm:$0xff] }
   0x7   :  { %117 = vmatpush.msra.mxu1 %v52_v9  ;;  %98 = vmatpush.msra.mxu0 %v35_v8  ;;  %v50_v15 = vld [vmem:[%s560_s1 + $0xe0] sm:$0xff]  ;;  %v81_v18 = vld [vmem:[%s560_s1 + $0x1d8] sm:$0xff]  ;;  %v32_v21 = vld [vmem:[%s560_s1 + $0x50] sm:$0xff] }
   0x8   :  { %158 = vmatpush.msra.mxu3 %v83_v10  ;;  %139 = vmatpush.msra.mxu2 %v66_v11  ;;  %v49_v19 = vld [vmem:[%s560_s1 + $0xd8] sm:$0xff]  ;;  %v80_v22 = vld [vmem:[%s560_s1 + $0x1d0] sm:$0xff]  ;;  %v63_v24 = vld [vmem:[%s560_s1 + $0x148] sm:$0xff] }
   0x9   :  { %118 = vmatpush.msra.mxu1 %v51_v13  ;;  %99 = vmatpush.msra.mxu0 %v34_v12  ;;  %v48_v23 = vld [vmem:[%s560_s1 + $0xd0] sm:$0xff]  ;;  %v31_v25 = vld [vmem:[%s560_s1 + $0x48] sm:$0xff]  ;;  %v62_v28 = vld [vmem:[%s560_s1 + $0x140] sm:$0xff] }
   0xa   :  { %159 = vmatpush.msra.mxu3 %v82_v14  ;;  %140 = vmatpush.msra.mxu2 %v65_v16  ;;  %v79_v26 = vld [vmem:[%s560_s1 + $0x1c8] sm:$0xff]  ;;  %v30_v29 = vld [vmem:[%s560_s1 + $0x40] sm:$0xff]  ;;  %v61_v32 = vld [vmem:[%s560_s1 + $0x138] sm:$0xff] }
   0xb   :  { %119 = vmatpush.msra.mxu1 %v50_v15  ;;  %100 = vmatpush.msra.mxu0 %v33_v17  ;;  %v47_v27 = vld [vmem:[%s560_s1 + $0xc8] sm:$0xff]  ;;  %v78_v30 = vld [vmem:[%s560_s1 + $0x1c0] sm:$0xff]  ;;  %v29_v33 = vld [vmem:[%s560_s1 + $0x38] sm:$0xff] }
   0xc   :  { %160 = vmatpush.msra.mxu3 %v81_v18  ;;  %141 = vmatpush.msra.mxu2 %v64_v20  ;;  %v46_v31 = vld [vmem:[%s560_s1 + $0xc0] sm:$0xff]  ;;  %v77_v34 = vld [vmem:[%s560_s1 + $0x1b8] sm:$0xff]  ;;  %v60_v36 = vld [vmem:[%s560_s1 + $0x130] sm:$0xff] }
   0xd   :  { %120 = vmatpush.msra.mxu1 %v49_v19  ;;  %101 = vmatpush.msra.mxu0 %v32_v21  ;;  %v45_v35 = vld [vmem:[%s560_s1 + $0xb8] sm:$0xff]  ;;  %v28_v37 = vld [vmem:[%s560_s1 + $0x30] sm:$0xff]  ;;  %v59_v40 = vld [vmem:[%s560_s1 + $0x128] sm:$0xff] }
   0xe   :  { %161 = vmatpush.msra.mxu3 %v80_v22  ;;  %142 = vmatpush.msra.mxu2 %v63_v24  ;;  %v76_v38 = vld [vmem:[%s560_s1 + $0x1b0] sm:$0xff]  ;;  %v27_v41 = vld [vmem:[%s560_s1 + $0x28] sm:$0xff]  ;;  %v58_v44 = vld [vmem:[%s560_s1 + $0x120] sm:$0xff] }
   0xf   :  { %121 = vmatpush.msra.mxu1 %v48_v23  ;;  %102 = vmatpush.msra.mxu0 %v31_v25  ;;  %v44_v39 = vld [vmem:[%s560_s1 + $0xb0] sm:$0xff]  ;;  %v75_v42 = vld [vmem:[%s560_s1 + $0x1a8] sm:$0xff]  ;;  %v26_v45 = vld [vmem:[%s560_s1 + $0x20] sm:$0xff] }
  0x10   :  { %162 = vmatpush.msra.mxu3 %v79_v26  ;;  %143 = vmatpush.msra.mxu2 %v62_v28  ;;  %v43_v43 = vld [vmem:[%s560_s1 + $0xa8] sm:$0xff]  ;;  %v74_v46 = vld [vmem:[%s560_s1 + $0x1a0] sm:$0xff]  ;;  %v57_v48 = vld [vmem:[%s560_s1 + $0x118] sm:$0xff] }
  0x11   :  { %122 = vmatpush.msra.mxu1 %v47_v27  ;;  %103 = vmatpush.msra.mxu0 %v30_v29  ;;  %v42_v47 = vld [vmem:[%s560_s1 + $0xa0] sm:$0xff]  ;;  %v25_v49 = vld [vmem:[%s560_s1 + $0x18] sm:$0xff] }
  0x12   :  { %163 = vmatpush.msra.mxu3 %v78_v30  ;;  %144 = vmatpush.msra.mxu2 %v61_v32  ;;  %v73_v50 = vld [vmem:[%s560_s1 + $0x198] sm:$0xff] }
  0x13   :  { %123 = vmatpush.msra.mxu1 %v46_v31  ;;  %104 = vmatpush.msra.mxu0 %v29_v33  ;;  %v41_v51 = vld [vmem:[%s560_s1 + $0x98] sm:$0xff] }
  0x14   :  { %164 = vmatpush.msra.mxu3 %v77_v34  ;;  %145 = vmatpush.msra.mxu2 %v60_v36 }
  0x15   :  { %124 = vmatpush.msra.mxu1 %v45_v35  ;;  %105 = vmatpush.msra.mxu0 %v28_v37 }
  0x16   :  { %165 = vmatpush.msra.mxu3 %v76_v38  ;;  %146 = vmatpush.msra.mxu2 %v59_v40 }
  0x17   :  { %125 = vmatpush.msra.mxu1 %v44_v39  ;;  %106 = vmatpush.msra.mxu0 %v27_v41 }
  0x18   :  { %166 = vmatpush.msra.mxu3 %v75_v42  ;;  %147 = vmatpush.msra.mxu2 %v58_v44 }
  0x19   :  { %126 = vmatpush.msra.mxu1 %v43_v43  ;;  %107 = vmatpush.msra.mxu0 %v26_v45 }
  0x1a   :  { %12 = vsyncpa [#allocation5], 0  ;;  %167 = vmatpush.msra.mxu3 %v74_v46  ;;  %v56_v52 = vld [vmem:[%s560_s1 + $0x110] sm:$0xff]  ;;  %148 = vmatpush.msra.mxu2 %v57_v48  ;;  %v21_v56 = vld [vmem:[%s559_s0] sm:$0xf]  ;;  %vm176_vm0 = vcmask 516096  }
  0x1b   :  { %127 = vmatpush.msra.mxu1 %v42_v47  ;;  %v24_v53 = vld [vmem:[%s560_s1 + $0x10] sm:$0xff]  ;;  %108 = vmatpush.msra.mxu0 %v25_v49  ;;  %v55_v57 = vld [vmem:[%s560_s1 + $0x108] sm:$0xff]  ;;  %v54_v61 = vld [vmem:[%s560_s1 + $0x100] sm:$0xff]  ;;  %v90_v62 = vperm.slane %v21_v56, 2  ;;  %v88_v1 = vperm.slane %v21_v56, 0  ;;  %v91_v2 = vperm.slane %v21_v56, 3 }
  0x1c   :  { %v72_v54 = vld [vmem:[%s560_s1 + $0x190] sm:$0xff]  ;;  %168 = vmatpush.msra.mxu3 %v73_v50  ;;  %v23_v58 = vld [vmem:[%s560_s1 + $0x8] sm:$0xff]  ;;  %149 = vmatpush.msra.mxu2 %v56_v52  ;;  %v22_v63 = vld [vmem:[%s560_s1] sm:$0xff]  ;;  %v89_v4 = vperm.slane %v21_v56, 1  ;;  %vm186_vm1 = vcmask 523264   ;;  %s299_s14 = smov [#allocation4]  }
  0x1d   :  { %v40_v55 = vld [vmem:[%s560_s1 + $0x90] sm:$0xff]  ;;  %128 = vmatpush.msra.mxu1 %v41_v51  ;;  %109 = vmatpush.msra.mxu0 %v24_v53  ;;  %v71_v59 = vld [vmem:[%s560_s1 + $0x188] sm:$0xff]  ;;  %v70_v0 = vld [vmem:[%s560_s1 + $0x180] sm:$0xff]  ;;  %s228_s0 = sshll.u32 %s299_s14, 4  ;;  %s219_s20 = sshll.u32 %s563_s4, 4  ;;  %vm210_vm2 = vcmask 122880   ;;  %s229_s0 = int_to_ptr.vmem [resolvable:$true] %s228_s0  ;;  %s220_s20 = int_to_ptr.hbm [resolvable:$true] %s219_s20 }
  0x1e   :  { %v39_v60 = vld [vmem:[%s560_s1 + $0x88] sm:$0xff]  ;;  %169 = vmatpush.msra.mxu3 %v72_v54  ;;  %150 = vmatpush.msra.mxu2 %v55_v57  ;;  %v38_v3 = vld [vmem:[%s560_s1 + $0x80] sm:$0xff]  ;;  %v185_v5 = vld [vmem:[%s562_s3 + $0x38] sm:$0xff] }
  0x1f   :  { %129 = vmatpush.msra.mxu1 %v40_v55  ;;  %110 = vmatpush.msra.mxu0 %v23_v58  ;;  %v184_v6 = vld [vmem:[%s562_s3 + $0x30] sm:$0xff]  ;;  %v183_v7 = vld [vmem:[%s562_s3 + $0x28] sm:$0xff]  ;;  %v182_v8 = vld [vmem:[%s562_s3 + $0x20] sm:$0xff] }
  0x20   :  { %170 = vmatpush.msra.mxu3 %v71_v59  ;;  %151 = vmatpush.msra.mxu2 %v54_v61  ;;  %v181_v9 = vld [vmem:[%s562_s3 + $0x18] sm:$0xff]  ;;  %v180_v10 = vld [vmem:[%s562_s3 + $0x10] sm:$0xff]  ;;  %v179_v11 = vld [vmem:[%s562_s3 + $0x8] sm:$0xff] }
  0x21   :  { %130 = vmatpush.msra.mxu1 %v39_v60  ;;  %111 = vmatpush.msra.mxu0 %v22_v63  ;;  %v178_v12 = vld [vmem:[%s562_s3] sm:$0xff]  ;;  %s230_s3 = sshll.u32 %s564_s5, 4  ;;  %s231_s3 = int_to_ptr.hbm [resolvable:$true] %s230_s3 }
  0x22   :  { %152 = vmatmul.f32.vlgmr.msra.gmra.mxu2 %v90_v62  ;;  %171 = vmatpush.msra.mxu3 %v70_v0  ;;  %v86_v13 = vld [vmem:[%s561_s2] sm:$0x1]  ;;  %s300_s2 = smov [#allocation2]  }
  0x23   :  { %112 = vmatmul.f32.vlgmr.msra.gmra.mxu0 %v88_v1  ;;  %172 = vmatmul.f32.vlgmr.msra.gmra.mxu3 %v91_v2  ;;  %s217_s17 = sshll.u32 %s300_s2, 4  ;;  %s218_s17 = int_to_ptr.vmem [resolvable:$true] %s217_s17 }
  0x24   :  { %131 = vmatpush.msra.mxu1 %v38_v3  ;;  %198 = vmatpush.msrb.mxu0 %v185_v5 }
  0x25   :  { %132 = vmatmul.f32.vlgmr.msra.gmra.mxu1 %v89_v4 }
  0x26   :  { %199 = vmatpush.msrb.mxu0 %v184_v6 }
  0x28   :  { %200 = vmatpush.msrb.mxu0 %v183_v7 }
  0x2a   :  { %201 = vmatpush.msrb.mxu0 %v182_v8 }
  0x2c   :  { %202 = vmatpush.msrb.mxu0 %v181_v9 }
  0x2e   :  { %203 = vmatpush.msrb.mxu0 %v180_v10 }
  0x30   :  { %204 = vmatpush.msrb.mxu0 %v179_v11 }
  0x32   :  { %205 = vmatpush.msrb.mxu0 %v178_v12 }
  0xa0   :  { %v113_v14 = vpop.f32.mrf.mxu0 }
  0xa1   :  { %v114_v15 = vadd.f32 %v113_v14, %v86_v13 }
  0xa2   :  { %v133_v16 = vpop.f32.mrf.mxu1 }
  0xa3   :  { %v134_v17 = vadd.f32 %v133_v16, %v114_v15 }
  0xa5   :  { %v153_v18 = vpop.f32.mrf.mxu2 }
  0xa6   :  { %v154_v19 = vadd.f32 %v153_v18, %v134_v17  ;;  %v173_v20 = vpop.f32.mrf.mxu3 }
  0xa8   :  { %v174_v21 = vadd.f32 %v173_v20, %v154_v19 }
  0xaa   :  { %177 = vst.msk [vmem:[#allocation4] sm:$0x1] %vm176_vm0, %v174_v21  ;;  %244 = vmatmul.msk.f32.vlgmr.msrb.gmra.mxu0 %vm186_vm1, %v174_v21 }
  0xab   :  { %233 = dma.vmem_to_hbm [thread:$0]  %s229_s0, 16, %s231_s3, [#allocation5]  }
 0x127   :  { %v207_v22 = vpop.f32.mrf.mxu0 }
 0x128   :  { %211 = vst.msk [vmem:[#allocation2] sm:$0x1] %vm210_vm2, %v207_v22 }
 0x129   :  { %222 = dma.vmem_to_hbm [thread:$0]  %s218_s17, 16, %s220_s20, [#allocation3]  }
 0x12a   :  { %295 = dma.done.wait [#allocation3], 16  }
 0x12b   :  { %296 = vsyncadd [#allocation3], 4294967280 }
 0x12c   :  { %297 = dma.done.wait [#allocation5], 16  }
 0x12d   :  { %298 = vsyncadd [#allocation5], 4294967280 }
 0x12e   :  { %242 = vsyncpa [#allocation3], 1 }
 0x12f   :  { %243 = vsyncpa [#allocation5], 1 }

</bundles_post_ra>
